<compile_context>
chip_gen: v7x
topology: tpu7x:2x2x1
jax: 0.10.0
libtpu: 0.0.40
codegen_flags: <defaults>
</compile_context>

<pallas_src>
import functools

import jax
import jax.numpy as jnp
from jax.experimental import pallas as pl
from jax.experimental.pallas import tpu as pltpu


# ----------------------------------------------------------------------------
# Fused kernel: Q(s), Q_target(s'), TD target and squared-error reduction
# ----------------------------------------------------------------------------
def _fused_dqn_td_loss_kernel(
    # batch-tiled inputs (VMEM)
    s_ref, ns_ref, aux_ref,
    # online params (VMEM, resident across the batch grid)
    w1_ref, b1_ref, w2_ref, b2_ref,
    # target params (VMEM, resident across the batch grid)
    tw1_ref, tb1_ref, tw2_ref, tb2_ref,
    # output: scalar loss in SMEM
    loss_ref,
    # scratch: SMEM sum-of-squared-error accumulator
    acc_ref,
    *, gamma, batch_size, tile_b,
):
    i = pl.program_id(0)

    @pl.when(i == 0)
    def _():
        acc_ref[0] = 0.0

    # --- online network: Q(s) = relu(s @ W1 + b1) @ W2 + b2 ------------------
    h = jnp.dot(s_ref[...], w1_ref[...], preferred_element_type=jnp.float32)
    h = jnp.maximum(h + b1_ref[...], 0.0)
    q = jnp.dot(h, w2_ref[...], preferred_element_type=jnp.float32) + b2_ref[...]

    # --- target network: Q_target(s') -----------------------------------------
    th = jnp.dot(ns_ref[...], tw1_ref[...], preferred_element_type=jnp.float32)
    th = jnp.maximum(th + tb1_ref[...], 0.0)
    tq = jnp.dot(th, tw2_ref[...], preferred_element_type=jnp.float32) + tb2_ref[...]

    # --- unpack the fused aux stream: (action, reward, done) -----------------
    aux = aux_ref[...]                        # [TB, 3] f32
    a_col = aux[:, 0:1].astype(jnp.int32)     # exact: actions are small ints
    r_col = aux[:, 1:2]
    d_col = aux[:, 2:3]

    # --- Q(s, a) via in-kernel one-hot mask (no [B, A] one-hot input) ---------
    col = jax.lax.broadcasted_iota(jnp.int32, q.shape, 1)
    act_mask = (col == a_col).astype(jnp.float32)
    q_sa = jnp.sum(q * act_mask, axis=-1, keepdims=True)        # [TB, 1]

    # --- TD target (forward value only; treated as a constant target) --------
    # TODO(synk): wrap in a custom-VJP stop_gradient if this kernel is ever
    # differentiated; forward semantics are identical either way.
    max_next = jnp.max(tq, axis=-1, keepdims=True)              # [TB, 1]
    td_target = r_col + gamma * (1.0 - d_col) * max_next
    diff = q_sa - td_target

    # Mask rows of a padded final batch tile out of the reduction.
    row = i * tile_b + jax.lax.broadcasted_iota(jnp.int32, diff.shape, 0)
    sq = jnp.where(row < batch_size, diff * diff, 0.0)

    acc_ref[0] += jnp.sum(sq)

    @pl.when(i == pl.num_programs(0) - 1)
    def _():
        loss_ref[0, 0] = acc_ref[0] * (1.0 / batch_size)


# ----------------------------------------------------------------------------
# Wrapper
# ----------------------------------------------------------------------------
def fused_dqn_td_loss(states, actions, rewards, next_states, dones,
                      params, target_params, gamma,
                      *, max_tile_b=512, compute_dtype=jnp.float32):
    B, S = states.shape
    H = params["w1"].shape[1]
    A = params["w2"].shape[1]

    # Batch tile: as large as reasonable (amortizes per-step overhead, feeds the
    # MXU), rounded up to a multiple of 8 to satisfy the (8, 128) block rule.
    tile_b = min(B, max_tile_b)
    tile_b = max(8, ((tile_b + 7) // 8) * 8)
    n_tiles = pl.cdiv(B, tile_b)

    # Matmul operands may be cast to bf16 (v6e/v7x) to halve HBM/VMEM bytes;
    # biases and all TD / elementwise arithmetic stay f32.
    s = states.astype(compute_dtype)
    ns = next_states.astype(compute_dtype)
    # Pack (action, reward, done) into one small batch-tiled stream.
    aux = jnp.stack([actions.astype(jnp.float32),
                     rewards.astype(jnp.float32),
                     dones.astype(jnp.float32)], axis=1)        # [B, 3]

    def w(x):
        return x.astype(compute_dtype)

    def b(x):
        return x.astype(jnp.float32)

    batch_spec = lambda cols: pl.BlockSpec((tile_b, cols), lambda i: (i, 0))
    resident = lambda shape: pl.BlockSpec(shape, lambda i: (0, 0))

    kernel = functools.partial(
        _fused_dqn_td_loss_kernel,
        gamma=float(gamma), batch_size=B, tile_b=tile_b)

    loss = pl.pallas_call(
        kernel,
        out_shape=jax.ShapeDtypeStruct((1, 1), jnp.float32),
        grid_spec=pltpu.PrefetchScalarGridSpec(
            num_scalar_prefetch=0,
            grid=(n_tiles,),
            in_specs=[
                batch_spec(S),      # states
                batch_spec(S),      # next_states
                batch_spec(3),      # aux = (action, reward, done)
                resident((S, H)),   # w1
                resident((1, H)),   # b1
                resident((H, A)),   # w2
                resident((1, A)),   # b2
                resident((S, H)),   # target w1
                resident((1, H)),   # target b1
                resident((H, A)),   # target w2
                resident((1, A)),   # target b2
            ],
            out_specs=pl.BlockSpec(memory_space=pltpu.MemorySpace.SMEM),
            scratch_shapes=[pltpu.SMEM((1,), jnp.float32)],
        ),
        # The batch axis accumulates into one scalar -> reduction axis.
        # TODO(synk): for v7x 2-TC chips with very large batches, emit per-tile
        # partial sums (lane-dense VMEM output) under a 'parallel' axis and sum
        # them in the wrapper; for typical RL batch sizes (<= tile_b) the grid
        # has a single step and this would only add overhead.
        compiler_params=pltpu.CompilerParams(
            dimension_semantics=("arbitrary",)),
    )(s, ns, aux,
      w(params["w1"]), b(params["b1"]), w(params["w2"]), b(params["b2"]),
      w(target_params["w1"]), b(target_params["b1"]),
      w(target_params["w2"]), b(target_params["b2"]))

    return loss[0, 0]


class PallasDQNLoss:
    """JAX/Pallas analogue of LossFunction (concrete DQN TD-loss subclass)."""

    def __init__(self, params, target_params, expected_horizon,
                 max_tile_b=512, compute_dtype=jnp.float32):
        self.params = params
        self.target_params = target_params
        self.gamma = 1.0 - 1.0 / float(expected_horizon)
        self.max_tile_b = max_tile_b
        self.compute_dtype = compute_dtype

    def forward(self, batch):
        states, actions, rewards, next_states, dones = batch
        return fused_dqn_td_loss(
            states, actions, rewards, next_states, dones,
            self.params, self.target_params, self.gamma,
            max_tile_b=self.max_tile_b, compute_dtype=self.compute_dtype)

    def update(self):
        # target_approximator.load_state_dict(approximator.state_dict())
        self.target_params = {k: v for k, v in self.params.items()}


# ----------------------------------------------------------------------------
# Example run / correctness check
# ----------------------------------------------------------------------------
def _init_params(key, state_dim, hidden, num_actions):
    k1, k2 = jax.random.split(key)
    return {
        "w1": (jax.random.normal(k1, (state_dim, hidden), jnp.float32)
               * (1.0 / state_dim ** 0.5)),
        "b1": jnp.zeros((1, hidden), jnp.float32),
        "w2": (jax.random.normal(k2, (hidden, num_actions), jnp.float32)
               * (1.0 / hidden ** 0.5)),
        "b2": jnp.zeros((1, num_actions), jnp.float32),
    }


def _ref_loss(states, actions, rewards, next_states, dones,
              params, target_params, gamma):
    def ref_mlp(x, p):
        h = jnp.maximum(x @ p["w1"] + p["b1"], 0.0)
        return h @ p["w2"] + p["b2"]

    q = ref_mlp(states, params)
    q_sa = jnp.take_along_axis(q, actions[:, None], axis=1)[:, 0]
    qn = ref_mlp(next_states, target_params)
    tgt = rewards + gamma * (1.0 - dones) * jnp.max(qn, axis=-1)
    return jnp.mean((q_sa - tgt) ** 2)


if __name__ == "__main__":
    key = jax.random.PRNGKey(0)
    S, H, A = 32, 32, 8
    expected_horizon = 100  # gamma = 0.99

    kp, kt = jax.random.split(key, 2)
    params = _init_params(kp, S, H, A)
    target_params = _init_params(kt, S, H, A)

    def make_batch(k, B):
        ks, ka, kr, kn, kd = jax.random.split(k, 5)
        states = jax.random.normal(ks, (B, S), jnp.float32)
        actions = jax.random.randint(ka, (B,), 0, A)
        rewards = jax.random.normal(kr, (B,), jnp.float32)
        next_states = jax.random.normal(kn, (B, S), jnp.float32)
        dones = (jax.random.uniform(kd, (B,)) < 0.2).astype(jnp.float32)
        return states, actions, rewards, next_states, dones

    # Case 1: single tile (B = 8).
    batch8 = make_batch(jax.random.PRNGKey(1), 8)
    loss_fn = PallasDQNLoss(params, target_params, expected_horizon)
    loss = loss_fn.forward(batch8)
    jax.block_until_ready(loss)
    ref = _ref_loss(*batch8, params, target_params, loss_fn.gamma)
    assert jnp.allclose(loss, ref, rtol=1e-5, atol=1e-5), (loss, ref)

    # Case 2: multi-tile grid with a padded final tile (B = 20, TILE_B = 8)
    # to exercise the accumulator and the padded-row masking.
    batch20 = make_batch(jax.random.PRNGKey(2), 20)
    loss_fn_tiled = PallasDQNLoss(params, target_params, expected_horizon,
                                  max_tile_b=8)
    loss2 = loss_fn_tiled.forward(batch20)
    jax.block_until_ready(loss2)
    ref2 = _ref_loss(*batch20, params, target_params, loss_fn_tiled.gamma)
    assert jnp.allclose(loss2, ref2, rtol=1e-5, atol=1e-5), (loss2, ref2)

    loss_fn.update()  # target <- online (mirrors LossFunction.update)

    print("KERNEL_OK")
</pallas_src>

<mosaic_0001>
module attributes {stable_mosaic.version = 11 : i64} {
  func.func @_fused_dqn_td_loss_kernel(%arg0: i32, %arg1: memref<8x32xf32, #tpu.memory_space<vmem>>, %arg2: memref<8x32xf32, #tpu.memory_space<vmem>>, %arg3: memref<8x3xf32, #tpu.memory_space<vmem>>, %arg4: memref<32x32xf32, #tpu.memory_space<vmem>>, %arg5: memref<1x32xf32, #tpu.memory_space<vmem>>, %arg6: memref<32x8xf32, #tpu.memory_space<vmem>>, %arg7: memref<1x8xf32, #tpu.memory_space<vmem>>, %arg8: memref<32x32xf32, #tpu.memory_space<vmem>>, %arg9: memref<1x32xf32, #tpu.memory_space<vmem>>, %arg10: memref<32x8xf32, #tpu.memory_space<vmem>>, %arg11: memref<1x8xf32, #tpu.memory_space<vmem>>, %arg12: memref<1x1xf32, #tpu.memory_space<smem>>, %arg13: memref<1xf32, #tpu.memory_space<smem>>) attributes {dimension_semantics = [#tpu.dimension_semantics<arbitrary>], iteration_bounds = array<i64: 1>, scalar_prefetch = 0 : i64, scratch_operands = 1 : i64, tpu.core_type = #tpu.core_type<tc>, window_params = [{transform_indices = @transform_0, window_bounds = array<i64: 8, 32>}, {transform_indices = @transform_1, window_bounds = array<i64: 8, 32>}, {transform_indices = @transform_2, window_bounds = array<i64: 8, 3>}, {pipeline_mode = #tpu.pipeline_mode<synchronous>, transform_indices = @transform_3, window_bounds = array<i64: 32, 32>}, {pipeline_mode = #tpu.pipeline_mode<synchronous>, transform_indices = @transform_4, window_bounds = array<i64: 1, 32>}, {pipeline_mode = #tpu.pipeline_mode<synchronous>, transform_indices = @transform_5, window_bounds = array<i64: 32, 8>}, {pipeline_mode = #tpu.pipeline_mode<synchronous>, transform_indices = @transform_6, window_bounds = array<i64: 1, 8>}, {pipeline_mode = #tpu.pipeline_mode<synchronous>, transform_indices = @transform_7, window_bounds = array<i64: 32, 32>}, {pipeline_mode = #tpu.pipeline_mode<synchronous>, transform_indices = @transform_8, window_bounds = array<i64: 1, 32>}, {pipeline_mode = #tpu.pipeline_mode<synchronous>, transform_indices = @transform_9, window_bounds = array<i64: 32, 8>}, {pipeline_mode = #tpu.pipeline_mode<synchronous>, transform_indices = @transform_10, window_bounds = array<i64: 1, 8>}, {transform_indices = @transform_11, window_bounds = array<i64: 1, 1>}]} {
    %c0_i32 = arith.constant 0 : i32
    %0 = arith.cmpi eq, %arg0, %c0_i32 : i32
    %1 = arith.extui %0 : i1 to i32
    %c0_i32_0 = arith.constant 0 : i32
    %2 = arith.cmpi ne, %1, %c0_i32_0 : i32
    scf.if %2 {
      %cst_38 = arith.constant 0.000000e+00 : f32
      %c0_39 = arith.constant 0 : index
      %70 = memref.load %arg13[%c0_39] : memref<1xf32, #tpu.memory_space<smem>>
      memref.store %cst_38, %arg13[%c0_39] : memref<1xf32, #tpu.memory_space<smem>>
    } else {
    }
    %c0 = arith.constant 0 : index
    %c0_1 = arith.constant 0 : index
    %3 = vector.load %arg1[%c0, %c0_1] : memref<8x32xf32, #tpu.memory_space<vmem>>, vector<8x32xf32>
    %c0_2 = arith.constant 0 : index
    %c0_3 = arith.constant 0 : index
    %4 = vector.load %arg4[%c0_2, %c0_3] : memref<32x32xf32, #tpu.memory_space<vmem>>, vector<32x32xf32>
    %cst = arith.constant dense<0.000000e+00> : vector<8x32xf32>
    %5 = tpu.matmul %3, %4, %cst {dimension_numbers = #tpu.dot_dimension_numbers<[1], [0], [0], [1], [0, 0, 1, 1], [], []>} : vector<8x32xf32>, vector<32x32xf32>, vector<8x32xf32> -> vector<8x32xf32>
    %c0_4 = arith.constant 0 : index
    %c0_5 = arith.constant 0 : index
    %6 = vector.load %arg5[%c0_4, %c0_5] : memref<1x32xf32, #tpu.memory_space<vmem>>, vector<1x32xf32>
    %7 = vector.broadcast %6 : vector<1x32xf32> to vector<8x32xf32>
    %8 = arith.addf %5, %7 : vector<8x32xf32>
    %cst_6 = arith.constant 0.000000e+00 : f32
    %9 = vector.broadcast %cst_6 : f32 to vector<8x32xf32>
    %10 = arith.maximumf %8, %9 : vector<8x32xf32>
    %c0_7 = arith.constant 0 : index
    %c0_8 = arith.constant 0 : index
    %11 = vector.load %arg6[%c0_7, %c0_8] : memref<32x8xf32, #tpu.memory_space<vmem>>, vector<32x8xf32>
    %cst_9 = arith.constant dense<0.000000e+00> : vector<8x8xf32>
    %12 = tpu.matmul %10, %11, %cst_9 {dimension_numbers = #tpu.dot_dimension_numbers<[1], [0], [0], [1], [0, 0, 1, 1], [], []>} : vector<8x32xf32>, vector<32x8xf32>, vector<8x8xf32> -> vector<8x8xf32>
    %c0_10 = arith.constant 0 : index
    %c0_11 = arith.constant 0 : index
    %13 = vector.load %arg7[%c0_10, %c0_11] : memref<1x8xf32, #tpu.memory_space<vmem>>, vector<1x8xf32>
    %14 = vector.broadcast %13 : vector<1x8xf32> to vector<8x8xf32>
    %15 = arith.addf %12, %14 : vector<8x8xf32>
    %c0_12 = arith.constant 0 : index
    %c0_13 = arith.constant 0 : index
    %16 = vector.load %arg2[%c0_12, %c0_13] : memref<8x32xf32, #tpu.memory_space<vmem>>, vector<8x32xf32>
    %c0_14 = arith.constant 0 : index
    %c0_15 = arith.constant 0 : index
    %17 = vector.load %arg8[%c0_14, %c0_15] : memref<32x32xf32, #tpu.memory_space<vmem>>, vector<32x32xf32>
    %cst_16 = arith.constant dense<0.000000e+00> : vector<8x32xf32>
    %18 = tpu.matmul %16, %17, %cst_16 {dimension_numbers = #tpu.dot_dimension_numbers<[1], [0], [0], [1], [0, 0, 1, 1], [], []>} : vector<8x32xf32>, vector<32x32xf32>, vector<8x32xf32> -> vector<8x32xf32>
    %c0_17 = arith.constant 0 : index
    %c0_18 = arith.constant 0 : index
    %19 = vector.load %arg9[%c0_17, %c0_18] : memref<1x32xf32, #tpu.memory_space<vmem>>, vector<1x32xf32>
    %20 = vector.broadcast %19 : vector<1x32xf32> to vector<8x32xf32>
    %21 = arith.addf %18, %20 : vector<8x32xf32>
    %cst_19 = arith.constant 0.000000e+00 : f32
    %22 = vector.broadcast %cst_19 : f32 to vector<8x32xf32>
    %23 = arith.maximumf %21, %22 : vector<8x32xf32>
    %c0_20 = arith.constant 0 : index
    %c0_21 = arith.constant 0 : index
    %24 = vector.load %arg10[%c0_20, %c0_21] : memref<32x8xf32, #tpu.memory_space<vmem>>, vector<32x8xf32>
    %cst_22 = arith.constant dense<0.000000e+00> : vector<8x8xf32>
    %25 = tpu.matmul %23, %24, %cst_22 {dimension_numbers = #tpu.dot_dimension_numbers<[1], [0], [0], [1], [0, 0, 1, 1], [], []>} : vector<8x32xf32>, vector<32x8xf32>, vector<8x8xf32> -> vector<8x8xf32>
    %c0_23 = arith.constant 0 : index
    %c0_24 = arith.constant 0 : index
    %26 = vector.load %arg11[%c0_23, %c0_24] : memref<1x8xf32, #tpu.memory_space<vmem>>, vector<1x8xf32>
    %27 = vector.broadcast %26 : vector<1x8xf32> to vector<8x8xf32>
    %28 = arith.addf %25, %27 : vector<8x8xf32>
    %c0_25 = arith.constant 0 : index
    %c0_26 = arith.constant 0 : index
    %29 = vector.load %arg3[%c0_25, %c0_26] : memref<8x3xf32, #tpu.memory_space<vmem>>, vector<8x3xf32>
    %30 = vector.extract_strided_slice %29 {offsets = [0, 0], sizes = [8, 1], strides = [1, 1]} : vector<8x3xf32> to vector<8x1xf32>
    %31 = arith.fptosi %30 : vector<8x1xf32> to vector<8x1xi32>
    %32 = vector.extract_strided_slice %29 {offsets = [0, 1], sizes = [8, 1], strides = [1, 1]} : vector<8x3xf32> to vector<8x1xf32>
    %33 = vector.extract_strided_slice %29 {offsets = [0, 2], sizes = [8, 1], strides = [1, 1]} : vector<8x3xf32> to vector<8x1xf32>
    %34 = tpu.iota {dimensions = array<i32: 1>} : vector<8x8xi32>
    %35 = vector.broadcast %31 : vector<8x1xi32> to vector<8x8xi32>
    %36 = arith.cmpi eq, %34, %35 : vector<8x8xi32>
    %37 = arith.extui %36 : vector<8x8xi1> to vector<8x8xi32>
    %38 = arith.sitofp %37 : vector<8x8xi32> to vector<8x8xf32>
    %39 = arith.mulf %15, %38 : vector<8x8xf32>
    %cst_27 = arith.constant dense<0.000000e+00> : vector<8xf32>
    %40 = vector.multi_reduction <add>, %39, %cst_27 [1] : vector<8x8xf32> to vector<8xf32>
    %41 = vector.shape_cast %40 : vector<8xf32> to vector<8x1xf32>
    %cst_28 = arith.constant dense<0xFF800000> : vector<8xf32>
    %42 = vector.multi_reduction <maximumf>, %28, %cst_28 [1] : vector<8x8xf32> to vector<8xf32>
    %43 = vector.shape_cast %42 : vector<8xf32> to vector<8x1xf32>
    %cst_29 = arith.constant 1.000000e+00 : f32
    %44 = vector.broadcast %cst_29 : f32 to vector<8x1xf32>
    %45 = arith.subf %44, %33 : vector<8x1xf32>
    %cst_30 = arith.constant 9.900000e-01 : f32
    %46 = vector.broadcast %cst_30 : f32 to vector<8x1xf32>
    %47 = arith.mulf %46, %45 : vector<8x1xf32>
    %48 = arith.mulf %47, %43 : vector<8x1xf32>
    %49 = arith.addf %32, %48 : vector<8x1xf32>
    %50 = arith.subf %41, %49 : vector<8x1xf32>
    %c8_i32 = arith.constant 8 : i32
    %51 = arith.muli %arg0, %c8_i32 : i32
    %52 = tpu.iota {dimensions = array<i32: 0>} : vector<8x1xi32>
    %53 = vector.broadcast %51 : i32 to vector<8x1xi32>
    %54 = arith.addi %53, %52 : vector<8x1xi32>
    %c8_i32_31 = arith.constant 8 : i32
    %55 = vector.broadcast %c8_i32_31 : i32 to vector<8x1xi32>
    %56 = arith.cmpi slt, %54, %55 : vector<8x1xi32>
    %57 = arith.mulf %50, %50 : vector<8x1xf32>
    %cst_32 = arith.constant 0.000000e+00 : f32
    %58 = vector.broadcast %cst_32 : f32 to vector<8x1xf32>
    %59 = arith.select %56, %57, %58 : vector<8x1xi1>, vector<8x1xf32>
    %c0_33 = arith.constant 0 : index
    %60 = memref.load %arg13[%c0_33] : memref<1xf32, #tpu.memory_space<smem>>
    %61 = vector.shape_cast %59 : vector<8x1xf32> to vector<1x8x1xf32>
    %cst_34 = arith.constant dense<0.000000e+00> : vector<1xf32>
    %62 = vector.multi_reduction <add>, %61, %cst_34 [1, 2] : vector<1x8x1xf32> to vector<1xf32>
    %63 = vector.shape_cast %62 : vector<1xf32> to vector<1x1x1xf32>
    %64 = vector.extract %63[0, 0, 0] : f32 from vector<1x1x1xf32>
    %65 = arith.addf %60, %64 : f32
    %c0_35 = arith.constant 0 : index
    %66 = memref.load %arg13[%c0_35] : memref<1xf32, #tpu.memory_space<smem>>
    memref.store %65, %arg13[%c0_35] : memref<1xf32, #tpu.memory_space<smem>>
    %c0_i32_36 = arith.constant 0 : i32
    %67 = arith.cmpi eq, %arg0, %c0_i32_36 : i32
    %68 = arith.extui %67 : i1 to i32
    %c0_i32_37 = arith.constant 0 : i32
    %69 = arith.cmpi ne, %68, %c0_i32_37 : i32
    scf.if %69 {
      %c0_38 = arith.constant 0 : index
      %70 = memref.load %arg13[%c0_38] : memref<1xf32, #tpu.memory_space<smem>>
      %cst_39 = arith.constant 1.250000e-01 : f32
      %71 = arith.mulf %70, %cst_39 : f32
      %c0_40 = arith.constant 0 : index
      %c0_41 = arith.constant 0 : index
      %72 = memref.load %arg12[%c0_40, %c0_41] : memref<1x1xf32, #tpu.memory_space<smem>>
      memref.store %71, %arg12[%c0_40, %c0_41] : memref<1x1xf32, #tpu.memory_space<smem>>
    } else {
    }
    return
  }
  func.func @transform_0(%arg0: i32) -> (i32, i32) {
    %c0_i32 = arith.constant 0 : i32
    %c0_i32_0 = arith.constant 0 : i32
    return %arg0, %c0_i32 : i32, i32
  }
  func.func @transform_1(%arg0: i32) -> (i32, i32) {
    %c0_i32 = arith.constant 0 : i32
    %c0_i32_0 = arith.constant 0 : i32
    return %arg0, %c0_i32 : i32, i32
  }
  func.func @transform_2(%arg0: i32) -> (i32, i32) {
    %c0_i32 = arith.constant 0 : i32
    %c0_i32_0 = arith.constant 0 : i32
    return %arg0, %c0_i32 : i32, i32
  }
  func.func @transform_3(%arg0: i32) -> (i32, i32) {
    %c0_i32 = arith.constant 0 : i32
    %c0_i32_0 = arith.constant 0 : i32
    %c0_i32_1 = arith.constant 0 : i32
    return %c0_i32, %c0_i32_0 : i32, i32
  }
  func.func @transform_4(%arg0: i32) -> (i32, i32) {
    %c0_i32 = arith.constant 0 : i32
    %c0_i32_0 = arith.constant 0 : i32
    %c0_i32_1 = arith.constant 0 : i32
    return %c0_i32, %c0_i32_0 : i32, i32
  }
  func.func @transform_5(%arg0: i32) -> (i32, i32) {
    %c0_i32 = arith.constant 0 : i32
    %c0_i32_0 = arith.constant 0 : i32
    %c0_i32_1 = arith.constant 0 : i32
    return %c0_i32, %c0_i32_0 : i32, i32
  }
  func.func @transform_6(%arg0: i32) -> (i32, i32) {
    %c0_i32 = arith.constant 0 : i32
    %c0_i32_0 = arith.constant 0 : i32
    %c0_i32_1 = arith.constant 0 : i32
    return %c0_i32, %c0_i32_0 : i32, i32
  }
  func.func @transform_7(%arg0: i32) -> (i32, i32) {
    %c0_i32 = arith.constant 0 : i32
    %c0_i32_0 = arith.constant 0 : i32
    %c0_i32_1 = arith.constant 0 : i32
    return %c0_i32, %c0_i32_0 : i32, i32
  }
  func.func @transform_8(%arg0: i32) -> (i32, i32) {
    %c0_i32 = arith.constant 0 : i32
    %c0_i32_0 = arith.constant 0 : i32
    %c0_i32_1 = arith.constant 0 : i32
    return %c0_i32, %c0_i32_0 : i32, i32
  }
  func.func @transform_9(%arg0: i32) -> (i32, i32) {
    %c0_i32 = arith.constant 0 : i32
    %c0_i32_0 = arith.constant 0 : i32
    %c0_i32_1 = arith.constant 0 : i32
    return %c0_i32, %c0_i32_0 : i32, i32
  }
  func.func @transform_10(%arg0: i32) -> (i32, i32) {
    %c0_i32 = arith.constant 0 : i32
    %c0_i32_0 = arith.constant 0 : i32
    %c0_i32_1 = arith.constant 0 : i32
    return %c0_i32, %c0_i32_0 : i32, i32
  }
  func.func @transform_11(%arg0: i32) -> (i32, i32) {
    %c0_i32 = arith.constant 0 : i32
    %c0_i32_0 = arith.constant 0 : i32
    %c0_i32_1 = arith.constant 0 : i32
    return %c0_i32, %c0_i32_0 : i32, i32
  }
}

</mosaic_0001>

<bundles_post_ra>
// kernel: tpu_custom_call.1
= control target key start
LH: loop header
LB: loop body
LE: loop exit
PB: predicated region body
PF: predicated region fallthrough
CT: control target
= control target key end

     0   :  { %16 = vsyncpa [#allocation4], 0  ;;  %s796_s0 = inlined_call_operand.vmem [shape: f32[8,32], index: 0, kind: input, shape index: {}]   ;;  %s797_s1 = inlined_call_operand.hbm [shape: f32[8,32], index: 1, kind: input, shape index: {}]   ;;  %s798_s2 = inlined_call_operand.vmem [shape: f32[8,3], index: 2, kind: input, shape index: {}]   ;;  %s799_s3 = inlined_call_operand.vmem [shape: f32[32,32], index: 3, kind: input, shape index: {}]   ;;  %s800_s4 = inlined_call_operand.vmem [shape: f32[1,32], index: 4, kind: input, shape index: {}]   ;;  %s801_s5 = inlined_call_operand.vmem [shape: f32[32,8], index: 5, kind: input, shape index: {}]   ;;  %s802_s6 = inlined_call_operand.vmem [shape: f32[1,8], index: 6, kind: input, shape index: {}]   ;;  %s803_s7 = inlined_call_operand.vmem [shape: f32[32,32], index: 7, kind: input, shape index: {}]   ;;  %s804_s8 = inlined_call_operand.vmem [shape: f32[1,32], index: 8, kind: input, shape index: {}]   ;;  %s805_s9 = inlined_call_operand.vmem [shape: f32[32,8], index: 9, kind: input, shape index: {}]   ;;  %s806_s10 = inlined_call_operand.vmem [shape: f32[1,8], index: 10, kind: input, shape index: {}]   ;;  %s807_s11 = inlined_call_operand.hbm [shape: f32[1,1], index: 11, kind: output, shape index: {}]  }
   0x1   :  { %17 = vsyncpa [#allocation5], 0  ;;  %s618_s17 = smov [#allocation3]   ;;  %s582_s21 = scalar_lea.hbm %s797_s1, 128 }
   0x2   :  { %s26_s18 = sshll.u32 %s618_s17, 4  ;;  %p583_p0 = scmp.ne.s32.totalorder %s797_s1, %s582_s21  ;;  %s27_s18 = int_to_ptr.vmem [resolvable:$true] %s26_s18 }
   0x3   :  { %p586_p1 = scmp.lt.u32.totalorder %s582_s21, %s797_s1 }
   0x5   :  { %p588_p2 = pnand %p586_p1, %p583_p0 }
   0x7   :  { %591 = shalt.err (!%p588_p2)
}
   0x8   :  { %s592_s26 = scalar_lea.vmem %s27_s18, 128  ;;  %p597_p4 = scmp.lt.s32.totalorder %s27_s18, %s27_s18 }
   0x9   :  { %p593_p3 = scmp.ne.s32.totalorder %s27_s18, %s592_s26  ;;  %p598_p5 = scmp.lt.s32.totalorder %s592_s26, %s592_s26 }
   0xb   :  { %p599_p6 = por %p598_p5, %p597_p4 }
   0xd   :  { %p600_p7 = pnand %p599_p6, %p593_p3 }
   0xf   :  { %603 = shalt.err (!%p600_p7)
}
  0x10   :  { %29 = dma.hbm_to_vmem [thread:$0]  %s797_s1, 128, %s27_s18, [#allocation4]  }
  0x11   :  { %614 = dma.done.wait [#allocation4], 128  }
  0x12   :  { %615 = vsyncadd [#allocation4], 4294967168  ;;  %v619_v0 = vmov 0.0|0.0   ;;  %vm620_vm0 = vmmov 0   ;;  %v621_v1 = vmov 0.0   ;;  %v58_v2 = vld [vmem:[%s799_s3] sm:$0xff]  ;;  %v400_v42 = vlaneseq }
  0x13   :  { %546 = vmatprep.subr.bf16.mxu0 %v619_v0  ;;  %510 = vmatprep.mubr.msk.f32.mxu0 %vm620_vm0, %v621_v1  ;;  %v59_v3 = vld [vmem:[%s799_s3 + $0x8] sm:$0xff]  ;;  %v60_v4 = vld [vmem:[%s799_s3 + $0x10] sm:$0xff]  ;;  %v61_v6 = vld [vmem:[%s799_s3 + $0x18] sm:$0xff]  ;;  %vm69_vm1 = vcmask 261120   ;;  %v622_v23 = vmov 0   ;;  %vm409_vm3 = vcmask 64512  }
  0x14   :  { %552 = vmatprep.subr.bf16.mxu1 %v619_v0  ;;  %521 = vmatprep.mubr.msk.f32.mxu1 %vm620_vm0, %v621_v1  ;;  %v547_v5 = vpack.c.bf16 %v59_v3, %v58_v2  ;;  %v550_v7 = vpack.c.bf16 %v61_v6, %v60_v4  ;;  %v144_v8 = vld [vmem:[%s801_s5] sm:$0xff]  ;;  %v145_v9 = vld [vmem:[%s801_s5 + $0x8] sm:$0xff]  ;;  %v231_v15 = vld [vmem:[%s803_s7 + $0x10] sm:$0xff]  ;;  %v401_v43 = vand.u32 127, %v400_v42  ;;  %vm438_vm4 = vcmask 7168   ;;  %s604_s27 = scalar_lea.hbm %s807_s11, 16 }
  0x15   :  { %v229_v10 = vld [vmem:[%s803_s7] sm:$0xff]  ;;  %v230_v11 = vld [vmem:[%s803_s7 + $0x8] sm:$0xff]  ;;  %v553_v12 = vpack.c.bf16 %v145_v9, %v144_v8  ;;  %v232_v16 = vld [vmem:[%s803_s7 + $0x18] sm:$0xff]  ;;  %581 = vset.pattern.permute.xlu0 %v622_v23  ;;  %p605_p8 = scmp.ne.s32.totalorder %s807_s11, %s604_s27  ;;  %p608_p9 = scmp.lt.u32.totalorder %s604_s27, %s807_s11 }
  0x16   :  { %548 = vmatpush3.bf16.msra.mxu0 %v547_v5  ;;  %v57_v13 = vld [vmem:[%s796_s0] sm:$0xff]  ;;  %v559_v14 = vpack.c.bf16 %v230_v11, %v229_v10  ;;  %v562_v17 = vpack.c.bf16 %v232_v16, %v231_v15  ;;  %v146_v19 = vld [vmem:[%s801_s5 + $0x10] sm:$0xff]  ;;  %v147_v20 = vld [vmem:[%s801_s5 + $0x18] sm:$0xff] }
  0x17   :  { %549 = vmatprep.subr.bf16.mxu0 %v619_v0  ;;  %554 = vmatpush3.bf16.msra.mxu1 %v553_v12  ;;  %v228_v18 = vld [vmem:[#allocation3] sm:$0xff]  ;;  %v556_v21 = vpack.c.bf16 %v147_v20, %v146_v19  ;;  %v315_v28 = vld [vmem:[%s805_s9 + $0x8] sm:$0xff]  ;;  %v316_v34 = vld [vmem:[%s805_s9 + $0x10] sm:$0xff]  ;;  %p610_p10 = pnand %p608_p9, %p605_p8 }
  0x18   :  { %555 = vmatprep.subr.bf16.mxu1 %v619_v0  ;;  %v398_v22 = vld [vmem:[%s798_s2] sm:$0xff]  ;;  %v317_v35 = vld [vmem:[%s805_s9 + $0x18] sm:$0xff] }
  0x19   :  { %v570_v24 = vtrunc.f32 %v398_v22  ;;  %v473_v26 = vld [vmem:[%s800_s4] ss:$0 sm:$0xff]  ;;  %v568_v37 = vpack.c.bf16 %v317_v35, %v316_v34  ;;  %v416_v57 = vsub.f32 1.0, %v398_v22 }
  0x1a   :  { %551 = vmatpush3.bf16.msra.mxu0 %v550_v7  ;;  %v314_v27 = vld [vmem:[%s805_s9] sm:$0xff] }
  0x1b   :  { %558 = vmatprep.subr.bf16.mxu0 %v619_v0  ;;  %557 = vmatpush3.bf16.msra.mxu1 %v556_v21  ;;  %v571_v25 = vcvt.f32.s32 %v570_v24  ;;  %v565_v32 = vpack.c.bf16 %v315_v28, %v314_v27  ;;  %v477_v36 = vld [vmem:[%s804_s8] ss:$0 sm:$0xff]  ;;  %v417_v58 = vmul.f32 0.99, %v416_v57 }
  0x1c   :  { %564 = vmatprep.subr.bf16.mxu1 %v619_v0  ;;  %v475_v45 = vld [vmem:[%s802_s6] ss:$0 sm:$0xff]  ;;  %s623_s6 = smov 127  }
  0x1d   :  { %511 = vmatmul.mubr.msk.f32.vlgmr.msra.gmra.mrb[0].mxu0 %vm69_vm1, %v57_v13  ;;  %403 = vperm.xlu0 %581, %v571_v25   ;;  %v479_v52 = vld [vmem:[%s806_s10] ss:$0 sm:$0xff] }
  0x1e   :  { %560 = vmatpush3.bf16.msra.mxu0 %v559_v14  ;;  %532 = vmatprep.mubr.msk.f32.mxu0 %vm620_vm0, %v621_v1 }
  0x1f   :  { %561 = vmatprep.subr.bf16.mxu0 %v619_v0 }
  0x22   :  { %563 = vmatpush3.bf16.msra.mxu0 %v562_v17 }
  0x25   :  { %533 = vmatmul.mubr.msk.f32.vlgmr.msra.gmra.mrb[2].mxu0 %vm69_vm1, %v228_v18 }
  0x9c   :  { %v404_v44 = vpop.permute.xlu0 %403 }
  0x9d   :  { %vm405_vm2 = vcmp.eq.s32.totalorder %v401_v43, %v404_v44 }
  0x9e   :  { %v481_v47 = vsel %vm405_vm2, 1.0, %v621_v1 }
  0xf0   :  { %v139_v29 = vpop.f32.mrb[0].mxu0 }
  0xf1   :  { %v140_v30 = vadd.f32 %v473_v26, %v139_v29  ;;  %v512_v31 = vpop.f32.mrb[1].mxu0 }
  0xf3   :  { %v143_v33 = vmax.f32 %v140_v30, 0.0 }
  0xf5   :  { %522 = vmatmul.mubr.msk.f32.vlgmr.msra.gmra.mrb[0].mxu1 %vm69_vm1, %v143_v33 }
  0xf6   :  { %566 = vmatpush3.bf16.msra.mxu1 %v565_v32  ;;  %543 = vmatprep.mubr.msk.f32.mxu1 %vm620_vm0, %v621_v1 }
  0xf7   :  { %567 = vmatprep.subr.bf16.mxu1 %v619_v0 }
  0xf8   :  { %v309_v38 = vpop.f32.mrb[2].mxu0 }
  0xf9   :  { %v310_v39 = vadd.f32 %v477_v36, %v309_v38  ;;  %v534_v40 = vpop.f32.mrb[3].mxu0 }
  0xfa   :  { %569 = vmatpush3.bf16.msra.mxu1 %v568_v37 }
  0xfb   :  { %v313_v41 = vmax.f32 %v310_v39, 0.0 }
  0xfd   :  { %544 = vmatmul.mubr.msk.f32.vlgmr.msra.gmra.mrb[2].mxu1 %vm69_vm1, %v313_v41 }
 0x1c8   :  { %v224_v46 = vpop.f32.mrb[0].mxu1 }
 0x1c9   :  { %v225_v48 = vadd.f32 %v475_v45, %v224_v46  ;;  %v523_v49 = vpop.f32.mrb[1].mxu1 }
 0x1cb   :  { %v408_v50 = vmul.f32 %v481_v47, %v225_v48 }
 0x1cd   :  { %v410_v51 = vsel %vm409_vm3, %v408_v50, 0.0 }
 0x1ce   :  { %411 = vadd.xlane.f32.xlu1 %v410_v51 }
 0x1d0   :  { %v394_v53 = vpop.f32.mrb[2].mxu1 }
 0x1d1   :  { %v395_v54 = vadd.f32 %v479_v52, %v394_v53  ;;  %v545_v55 = vpop.f32.mrb[3].mxu1 }
 0x1d3   :  { %v413_v56 = vsel %vm409_vm3, %v395_v54, -inf }
 0x1d4   :  { %414 = vmax.xlane.f32.xlu0 %v413_v56 }
 0x25b   :  { %v412_v61 = vpop.xlane.xlu1 %411 }
 0x261   :  { %v415_v59 = vpop.xlane.xlu0 %414 }
 0x262   :  { %v418_v60 = vmul.f32 %v417_v58, %v415_v59 }
 0x264   :  { %420 = vrot.lane.b32.xlu1 %v418_v60, %s623_s6 }
 0x2d6   :  { %v421_v62 = vpop.permute.xlu1 %420 }
 0x2d7   :  { %v423_v63 = vadd.f32 %v421_v62, %v398_v22 }
 0x2d9   :  { %v424_v0 = vsub.f32 %v412_v61, %v423_v63 }
 0x2db   :  { %v431_v1 = vmul.f32 %v424_v0, %v424_v0 }
 0x2dd   :  { %435 = vrot.lane.b32.xlu1 %v431_v1, %s623_s6 }
 0x34f   :  { %v436_v2 = vpop.permute.xlu1 %435 }
 0x350   :  { %v439_v3 = vsel %vm438_vm4, %v436_v2, 0.0 }
 0x351   :  { %440 = vadd.xlane.f32.xlu1 %v439_v3 }
 0x3de   :  { %v441_v4 = vpop.xlane.xlu1 %440 }
 0x3df   :  { %v442_v5 = vrot.slane %v441_v4, 4 }
 0x3e1   :  { %v443_v6 = vadd.f32 %v442_v5, %v441_v4 }
 0x3e3   :  { %v444_v7 = vrot.slane %v443_v6, 2 }
 0x3e5   :  { %v445_v8 = vadd.f32 %v444_v7, %v443_v6 }
 0x3e7   :  { %v446_v9 = vrot.slane %v445_v8, 1 }
 0x3e9   :  { %v447_v10 = vadd.f32 %v446_v9, %v445_v8 }
 0x3eb   :  { %572 = vpush %v447_v10 }
 0x41c   :  { %s573_s10 = spop %572 }
 0x41d   :  { %s456_s3 = smul.f32 0.125, %s573_s10 }
 0x41f   :  { %458 = sst [smem:[#allocation6]] %s456_s3 }
 0x420   :  { %613 = shalt.err (!%p610_p10)
}
 0x421   :  { %s624_s1 = smov [#allocation6]  }
 0x422   :  { %466 = dma.smem_to_hbm %s624_s1, 16, %s807_s11, [#allocation5]  }
 0x423   :  { %616 = dma.done.wait [#allocation5], 16  }
 0x424   :  { %617 = vsyncadd [#allocation5], 4294967280 }
 0x425   :  { %470 = sfence }
 0x426   :  { %471 = vsyncpa [#allocation4], 1 }
 0x427   :  { %472 = vsyncpa [#allocation5], 1 }

</bundles_post_ra>
